<compile_context>
chip_gen: v7x
topology: tpu7x:2x2x1
jax: 0.10.0
libtpu: 0.0.40
codegen_flags: <defaults>
</compile_context>

<pallas_src>
import math

import jax
import jax.numpy as jnp
from jax.experimental import pallas as pl
from jax.experimental.pallas import tpu as pltpu

_LANE = 128           # lane width; LoRA rank is padded to this
_VMEM_LIMIT = 48 * 1024 * 1024   # safe on v7x (64 MiB physical), fine on v5e/v6e


def _round_up(x, m):
    return ((x + m - 1) // m) * m


def _sublane_min(dtype):
    # f32 -> 8, bf16 -> 16, int8/fp8 -> 32
    return max(8, 32 // jnp.dtype(dtype).itemsize)


def _make_lora_kernel(acc_in_out):
    """Build the fused kernel.

    Per (i, j, k) grid step:
      acc (tm, tn) f32 : bias + sum_k x_ik @ W_kj      (resident across k)
      at k == last     : out = acc + xa_i @ B_j        (xa precomputed, scaled)
    If acc_in_out, the accumulator IS the resident f32 output block (no scratch).
    """

    def kernel(x_ref, w_ref, b_ref, xa_ref, bsc_ref, o_ref, *scratch):
        acc_ref = o_ref if acc_in_out else scratch[0]
        k = pl.program_id(2)

        prod = jnp.dot(x_ref[...], w_ref[...],
                       preferred_element_type=jnp.float32)

        @pl.when(k == 0)
        def _init():
            # Fuse bias into the first K-step write: one store, no RMW.
            acc_ref[...] = (prod + b_ref[...].astype(jnp.float32)
                            ).astype(acc_ref.dtype)

        @pl.when(k > 0)
        def _accum():
            acc_ref[...] += prod.astype(acc_ref.dtype)

        @pl.when(k == pl.num_programs(2) - 1)
        def _finish():
            # Rank-128-padded LoRA expand; xa already carries the LoRA scaling.
            lora = jnp.dot(xa_ref[...], bsc_ref[...],
                           preferred_element_type=jnp.float32)
            if acc_in_out:
                o_ref[...] += lora.astype(o_ref.dtype)
            else:
                o_ref[...] = (acc_ref[...] + lora).astype(o_ref.dtype)

    return kernel


def prepare_lora_params(w, bias, lora_a, lora_b, *, lora_alpha=16,
                        tm=512, tn=512, tk=512):
    """Pad/stage static parameters ONCE (hoisted out of the per-call path)."""
    in_dim, out_dim = w.shape
    r = lora_a.shape[-1]
    scaling = float(lora_alpha) / float(r)

    tn = min(tn, _round_up(out_dim, 128))
    tk = min(tk, _round_up(in_dim, 128))
    np_ = _round_up(out_dim, tn)
    kp = _round_up(in_dim, tk)

    w_p = jnp.pad(w, ((0, kp - in_dim), (0, np_ - out_dim)))
    bias_p = jnp.pad(bias.reshape(1, out_dim), ((0, 0), (0, np_ - out_dim)))
    # Lane-dense rank padding (r -> 128).  A stays f32 for an exact, tiny
    # down-projection in the wrapper; B keeps its own dtype (no scale folding).
    a_p = jnp.pad(lora_a.astype(jnp.float32), ((0, 0), (0, _LANE - r)))
    b_p = jnp.pad(lora_b, ((0, _LANE - r), (0, np_ - out_dim)))

    return dict(w=w_p, bias=bias_p, a=a_p, b=b_p, scaling=scaling,
                in_dim=in_dim, out_dim=out_dim, np_=np_, kp=kp,
                tm=tm, tn=tn, tk=tk)


def linear_lora_forward(x, params):
    """x: (..., in_dim) -> (..., out_dim)."""
    in_dim, out_dim = params["in_dim"], params["out_dim"]
    np_, kp = params["np_"], params["kp"]
    tn, tk = params["tn"], params["tk"]

    lead = x.shape[:-1]
    m = math.prod(lead) if lead else 1
    x2d = x.reshape(m, in_dim)

    smin = _sublane_min(x.dtype)
    tm = min(params["tm"], _round_up(m, smin))
    mp = _round_up(m, tm)

    # Rank-8 LoRA down-projection, done ONCE per call outside the kernel
    # (trivial skinny matmul).  Scaling applied in f32 -> exact.
    xa = (x2d.astype(jnp.float32) @ params["a"]) * params["scaling"]  # (m, 128)

    # Runtime padding only for activation-shaped tensors.
    x_p = jnp.pad(x2d, ((0, mp - m), (0, kp - in_dim)))
    xa_p = jnp.pad(xa, ((0, mp - m), (0, 0)))

    out_dtype = x.dtype
    acc_in_out = jnp.dtype(out_dtype) == jnp.float32
    scratch = [] if acc_in_out else [pltpu.VMEM((tm, tn), jnp.float32)]

    grid = (mp // tm, np_ // tn, kp // tk)
    itemsize = jnp.dtype(out_dtype).itemsize
    cost = pl.CostEstimate(
        flops=2 * mp * np_ * kp + 2 * mp * _LANE * np_,
        transcendentals=0,
        bytes_accessed=(x_p.size + params["w"].size + params["bias"].size
                        + xa_p.size + params["b"].size) * itemsize
                       + mp * np_ * itemsize,
    )

    out_p = pl.pallas_call(
        _make_lora_kernel(acc_in_out),
        out_shape=jax.ShapeDtypeStruct((mp, np_), out_dtype),
        grid_spec=pltpu.PrefetchScalarGridSpec(
            num_scalar_prefetch=0,
            grid=grid,
            in_specs=[
                pl.BlockSpec((tm, tk), lambda i, j, k: (i, k)),      # x
                pl.BlockSpec((tk, tn), lambda i, j, k: (k, j)),      # W
                pl.BlockSpec((1, tn), lambda i, j, k: (0, j)),       # bias
                pl.BlockSpec((tm, _LANE), lambda i, j, k: (i, 0)),   # xa (scaled)
                pl.BlockSpec((_LANE, tn), lambda i, j, k: (0, j)),   # B (rank-padded)
            ],
            out_specs=pl.BlockSpec((tm, tn), lambda i, j, k: (i, j)),
            scratch_shapes=scratch,
        ),
        compiler_params=pltpu.CompilerParams(
            dimension_semantics=("parallel", "parallel", "arbitrary"),
            vmem_limit_bytes=_VMEM_LIMIT,
        ),
        cost_estimate=cost,
    )(x_p, params["w"], params["bias"], xa_p, params["b"])

    out2d = out_p[:m, :out_dim]
    return out2d.reshape(*lead, out_dim)


if __name__ == "__main__":
    # Small deterministic setup consistent with LinearLoRA(in_dim=32, out_dim=64, r=8).
    batch, seq, in_dim, out_dim, r, lora_alpha = 2, 8, 32, 64, 8, 16

    key = jax.random.PRNGKey(0)
    kx, kw, kb, ka, kB = jax.random.split(key, 5)

    x = jax.random.normal(kx, (batch, seq, in_dim), dtype=jnp.float32)
    # Parameters stored in right-multiply layout (transposed vs nn.Linear.weight).
    w = jax.random.normal(kw, (in_dim, out_dim), dtype=jnp.float32) * 0.1
    bias = jax.random.normal(kb, (out_dim,), dtype=jnp.float32) * 0.1
    lora_a = jax.random.normal(ka, (in_dim, r), dtype=jnp.float32) * 0.1
    # nn.init.constant_(lora_B, 0) would zero the LoRA path; use small nonzero
    # values here so the low-rank branch is actually exercised.
    lora_b = jax.random.normal(kB, (r, out_dim), dtype=jnp.float32) * 0.1

    # TODO(synk): lora_dropout is identity for p=0.0 (module default); nonzero
    # dropout would need a PRNG mask in the wrapper.
    params = prepare_lora_params(w, bias, lora_a, lora_b, lora_alpha=lora_alpha)
    out = linear_lora_forward(x, params)
    out = jax.block_until_ready(out)

    # Pure-JAX reference (dropout p=0 -> identity).
    scaling = lora_alpha / r
    ref = x @ w + bias + scaling * ((x @ lora_a) @ lora_b)
    assert out.shape == (batch, seq, out_dim)
    assert jnp.allclose(out, ref, atol=1e-4, rtol=1e-5), "mismatch vs reference"

    print("KERNEL_OK")
</pallas_src>

<mosaic_0001>
module attributes {stable_mosaic.version = 11 : i64} {
  func.func @kernel(%arg0: i32, %arg1: i32, %arg2: i32, %arg3: memref<16x128xf32, #tpu.memory_space<vmem>>, %arg4: memref<128x128xf32, #tpu.memory_space<vmem>>, %arg5: memref<1x128xf32, #tpu.memory_space<vmem>>, %arg6: memref<16x128xf32, #tpu.memory_space<vmem>>, %arg7: memref<128x128xf32, #tpu.memory_space<vmem>>, %arg8: memref<16x128xf32, #tpu.memory_space<vmem>>) attributes {dimension_semantics = [#tpu.dimension_semantics<parallel>, #tpu.dimension_semantics<parallel>, #tpu.dimension_semantics<arbitrary>], iteration_bounds = array<i64: 1, 1, 1>, scalar_prefetch = 0 : i64, scratch_operands = 0 : i64, tpu.core_type = #tpu.core_type<tc>, window_params = [{transform_indices = @transform_0, window_bounds = array<i64: 16, 128>}, {transform_indices = @transform_1, window_bounds = array<i64: 128, 128>}, {transform_indices = @transform_2, window_bounds = array<i64: 1, 128>}, {transform_indices = @transform_3, window_bounds = array<i64: 16, 128>}, {transform_indices = @transform_4, window_bounds = array<i64: 128, 128>}, {transform_indices = @transform_5, window_bounds = array<i64: 16, 128>}]} {
    %c0 = arith.constant 0 : index
    %c0_0 = arith.constant 0 : index
    %0 = vector.load %arg3[%c0, %c0_0] : memref<16x128xf32, #tpu.memory_space<vmem>>, vector<16x128xf32>
    %c0_1 = arith.constant 0 : index
    %c0_2 = arith.constant 0 : index
    %1 = vector.load %arg4[%c0_1, %c0_2] : memref<128x128xf32, #tpu.memory_space<vmem>>, vector<128x128xf32>
    %cst = arith.constant dense<0.000000e+00> : vector<16x128xf32>
    %2 = tpu.matmul %0, %1, %cst {dimension_numbers = #tpu.dot_dimension_numbers<[1], [0], [0], [1], [0, 0, 1, 1], [], []>} : vector<16x128xf32>, vector<128x128xf32>, vector<16x128xf32> -> vector<16x128xf32>
    %c0_i32 = arith.constant 0 : i32
    %3 = arith.cmpi eq, %arg2, %c0_i32 : i32
    %4 = arith.extui %3 : i1 to i32
    %c0_i32_3 = arith.constant 0 : i32
    %5 = arith.cmpi ne, %4, %c0_i32_3 : i32
    scf.if %5 {
      %c0_8 = arith.constant 0 : index
      %c0_9 = arith.constant 0 : index
      %12 = vector.load %arg5[%c0_8, %c0_9] : memref<1x128xf32, #tpu.memory_space<vmem>>, vector<1x128xf32>
      %13 = vector.broadcast %12 : vector<1x128xf32> to vector<16x128xf32>
      %14 = arith.addf %2, %13 : vector<16x128xf32>
      %c0_10 = arith.constant 0 : index
      %c0_11 = arith.constant 0 : index
      %15 = vector.load %arg8[%c0_10, %c0_11] : memref<16x128xf32, #tpu.memory_space<vmem>>, vector<16x128xf32>
      tpu.vector_store %arg8[%c0_10, %c0_11], %14 {strides = array<i32>} : memref<16x128xf32, #tpu.memory_space<vmem>>, vector<16x128xf32>,
    } else {
    }
    %c0_i32_4 = arith.constant 0 : i32
    %6 = arith.cmpi sgt, %arg2, %c0_i32_4 : i32
    %7 = arith.extui %6 : i1 to i32
    %c0_i32_5 = arith.constant 0 : i32
    %8 = arith.cmpi ne, %7, %c0_i32_5 : i32
    scf.if %8 {
      %c0_8 = arith.constant 0 : index
      %c0_9 = arith.constant 0 : index
      %12 = vector.load %arg8[%c0_8, %c0_9] : memref<16x128xf32, #tpu.memory_space<vmem>>, vector<16x128xf32>
      %13 = arith.addf %12, %2 : vector<16x128xf32>
      %c0_10 = arith.constant 0 : index
      %c0_11 = arith.constant 0 : index
      %14 = vector.load %arg8[%c0_10, %c0_11] : memref<16x128xf32, #tpu.memory_space<vmem>>, vector<16x128xf32>
      tpu.vector_store %arg8[%c0_10, %c0_11], %13 {strides = array<i32>} : memref<16x128xf32, #tpu.memory_space<vmem>>, vector<16x128xf32>,
    } else {
    }
    %c0_i32_6 = arith.constant 0 : i32
    %9 = arith.cmpi eq, %arg2, %c0_i32_6 : i32
    %10 = arith.extui %9 : i1 to i32
    %c0_i32_7 = arith.constant 0 : i32
    %11 = arith.cmpi ne, %10, %c0_i32_7 : i32
    scf.if %11 {
      %c0_8 = arith.constant 0 : index
      %c0_9 = arith.constant 0 : index
      %12 = vector.load %arg6[%c0_8, %c0_9] : memref<16x128xf32, #tpu.memory_space<vmem>>, vector<16x128xf32>
      %c0_10 = arith.constant 0 : index
      %c0_11 = arith.constant 0 : index
      %13 = vector.load %arg7[%c0_10, %c0_11] : memref<128x128xf32, #tpu.memory_space<vmem>>, vector<128x128xf32>
      %cst_12 = arith.constant dense<0.000000e+00> : vector<16x128xf32>
      %14 = tpu.matmul %12, %13, %cst_12 {dimension_numbers = #tpu.dot_dimension_numbers<[1], [0], [0], [1], [0, 0, 1, 1], [], []>} : vector<16x128xf32>, vector<128x128xf32>, vector<16x128xf32> -> vector<16x128xf32>
      %c0_13 = arith.constant 0 : index
      %c0_14 = arith.constant 0 : index
      %15 = vector.load %arg8[%c0_13, %c0_14] : memref<16x128xf32, #tpu.memory_space<vmem>>, vector<16x128xf32>
      %16 = arith.addf %15, %14 : vector<16x128xf32>
      %c0_15 = arith.constant 0 : index
      %c0_16 = arith.constant 0 : index
      %17 = vector.load %arg8[%c0_15, %c0_16] : memref<16x128xf32, #tpu.memory_space<vmem>>, vector<16x128xf32>
      tpu.vector_store %arg8[%c0_15, %c0_16], %16 {strides = array<i32>} : memref<16x128xf32, #tpu.memory_space<vmem>>, vector<16x128xf32>,
    } else {
    }
    return
  }
  func.func @transform_0(%arg0: i32, %arg1: i32, %arg2: i32) -> (i32, i32) {
    %c0_i32 = arith.constant 0 : i32
    return %arg0, %arg2 : i32, i32
  }
  func.func @transform_1(%arg0: i32, %arg1: i32, %arg2: i32) -> (i32, i32) {
    %c0_i32 = arith.constant 0 : i32
    return %arg2, %arg1 : i32, i32
  }
  func.func @transform_2(%arg0: i32, %arg1: i32, %arg2: i32) -> (i32, i32) {
    %c0_i32 = arith.constant 0 : i32
    %c0_i32_0 = arith.constant 0 : i32
    return %c0_i32, %arg1 : i32, i32
  }
  func.func @transform_3(%arg0: i32, %arg1: i32, %arg2: i32) -> (i32, i32) {
    %c0_i32 = arith.constant 0 : i32
    %c0_i32_0 = arith.constant 0 : i32
    return %arg0, %c0_i32 : i32, i32
  }
  func.func @transform_4(%arg0: i32, %arg1: i32, %arg2: i32) -> (i32, i32) {
    %c0_i32 = arith.constant 0 : i32
    %c0_i32_0 = arith.constant 0 : i32
    return %c0_i32, %arg1 : i32, i32
  }
  func.func @transform_5(%arg0: i32, %arg1: i32, %arg2: i32) -> (i32, i32) {
    %c0_i32 = arith.constant 0 : i32
    return %arg0, %arg1 : i32, i32
  }
}

</mosaic_0001>

<bundles_post_ra>
// kernel: tpu_custom_call.1
= control target key start
LH: loop header
LB: loop body
LE: loop exit
PB: predicated region body
PF: predicated region fallthrough
CT: control target
= control target key end

     0   :  { %10 = vsyncpa [#allocation3], 0  ;;  %s748_s0 = inlined_call_operand.hbm [shape: f32[16,128], index: 0, kind: input, shape index: {}]   ;;  %s749_s1 = inlined_call_operand.hbm [shape: f32[128,128], index: 1, kind: input, shape index: {}]   ;;  %s750_s2 = inlined_call_operand.vmem [shape: f32[1,128], index: 2, kind: input, shape index: {}]   ;;  %s751_s3 = inlined_call_operand.hbm [shape: f32[16,128], index: 3, kind: input, shape index: {}]   ;;  %s752_s4 = inlined_call_operand.hbm [shape: f32[128,128], index: 4, kind: input, shape index: {}]   ;;  %s753_s5 = inlined_call_operand.hbm [shape: f32[16,128], index: 5, kind: output, shape index: {}]  }
   0x1   :  { %11 = vsyncpa [#allocation6], 0 }
   0x2   :  { %12 = vsyncpa [#allocation9], 0 }
   0x3   :  { %13 = vsyncpa [#allocation4], 0  ;;  %s619_s18 = smov [#allocation5]   ;;  %s620_s20 = smov [#allocation2]  }
   0x4   :  { %s31_s19 = sshll.u32 %s619_s18, 4  ;;  %s19_s21 = sshll.u32 %s620_s20, 4  ;;  %s32_s19 = int_to_ptr.vmem [resolvable:$true] %s31_s19  ;;  %s656_s21 = int_to_ptr.vmem [resolvable:$true] %s19_s21 }
   0x5   :  { %s501_s24 = scalar_lea.hbm %s749_s1, 2048 }
   0x6   :  { %p502_p0 = scmp.ne.s32.totalorder %s749_s1, %s501_s24  ;;  %p505_p1 = scmp.lt.u32.totalorder %s501_s24, %s749_s1 }
   0x8   :  { %p507_p2 = pnand %p505_p1, %p502_p0 }
   0xa   :  { %510 = shalt.err (!%p507_p2)
}
   0xb   :  { %s511_s29 = scalar_lea.vmem %s32_s19, 2048  ;;  %p516_p4 = scmp.lt.s32.totalorder %s32_s19, %s32_s19 }
   0xc   :  { %p512_p3 = scmp.ne.s32.totalorder %s32_s19, %s511_s29  ;;  %p517_p5 = scmp.lt.s32.totalorder %s511_s29, %s511_s29 }
   0xe   :  { %p518_p6 = por %p517_p5, %p516_p4 }
  0x10   :  { %p519_p7 = pnand %p518_p6, %p512_p3 }
  0x12   :  { %522 = shalt.err (!%p519_p7)
}
  0x13   :  { %s621_s30 = smov 128   ;;  %s622_s6 = smov 8  }
  0x14   :  { %37 = dma.hbm_to_vmem [thread:$0]  %s749_s1, 2048, %s32_s19, [#allocation6], %s621_s30, %s621_s30, %s622_s6  }
  0x15   :  { %s523_s11 = scalar_lea.hbm %s748_s0, 256 }
  0x16   :  { %p524_p8 = scmp.ne.s32.totalorder %s748_s0, %s523_s11  ;;  %p527_p9 = scmp.lt.u32.totalorder %s523_s11, %s748_s0 }
  0x18   :  { %p529_p10 = pnand %p527_p9, %p524_p8 }
  0x1a   :  { %532 = shalt.err (!%p529_p10)
}
  0x1b   :  { %s533_s16 = scalar_lea.vmem %s656_s21, 256  ;;  %p538_p12 = scmp.lt.s32.totalorder %s656_s21, %s656_s21 }
  0x1c   :  { %p534_p11 = scmp.ne.s32.totalorder %s656_s21, %s533_s16  ;;  %p539_p13 = scmp.lt.s32.totalorder %s533_s16, %s533_s16 }
  0x1e   :  { %p540_p0 = por %p539_p13, %p538_p12 }
  0x20   :  { %p541_p1 = pnand %p540_p0, %p534_p11 }
  0x22   :  { %544 = shalt.err (!%p541_p1)
}
  0x23   :  { %25 = dma.hbm_to_vmem [thread:$0]  %s748_s0, 256, %s656_s21, [#allocation3], %s621_s30, %s621_s30, %s622_s6  }
  0x24   :  { %s623_s18 = smov [#allocation7]   ;;  %s624_s20 = smov [#allocation8]  }
  0x25   :  { %s45_s19 = sshll.u32 %s623_s18, 4  ;;  %s57_s22 = sshll.u32 %s624_s20, 4  ;;  %s46_s19 = int_to_ptr.vmem [resolvable:$true] %s45_s19  ;;  %s693_s22 = int_to_ptr.vmem [resolvable:$true] %s57_s22 }
  0x26   :  { %s545_s25 = scalar_lea.hbm %s751_s3, 256 }
  0x27   :  { %p546_p2 = scmp.ne.s32.totalorder %s751_s3, %s545_s25  ;;  %p549_p3 = scmp.lt.u32.totalorder %s545_s25, %s751_s3 }
  0x29   :  { %p551_p4 = pnand %p549_p3, %p546_p2 }
  0x2b   :  { %554 = shalt.err (!%p551_p4)
}
  0x2c   :  { %s555_s0 = scalar_lea.vmem %s46_s19, 256  ;;  %p560_p6 = scmp.lt.s32.totalorder %s46_s19, %s46_s19 }
  0x2d   :  { %p556_p5 = scmp.ne.s32.totalorder %s46_s19, %s555_s0  ;;  %p561_p7 = scmp.lt.s32.totalorder %s555_s0, %s555_s0 }
  0x2f   :  { %p562_p8 = por %p561_p7, %p560_p6 }
  0x31   :  { %p563_p9 = pnand %p562_p8, %p556_p5 }
  0x33   :  { %566 = shalt.err (!%p563_p9)
}
  0x34   :  { %51 = dma.hbm_to_vmem [thread:$0]  %s751_s3, 256, %s46_s19, [#allocation6], %s621_s30, %s621_s30, %s622_s6  }
  0x35   :  { %s567_s10 = scalar_lea.hbm %s752_s4, 2048 }
  0x36   :  { %p568_p10 = scmp.ne.s32.totalorder %s752_s4, %s567_s10  ;;  %p571_p11 = scmp.lt.u32.totalorder %s567_s10, %s752_s4 }
  0x38   :  { %p573_p12 = pnand %p571_p11, %p568_p10 }
  0x3a   :  { %576 = shalt.err (!%p573_p12)
}
  0x3b   :  { %s577_s15 = scalar_lea.vmem %s693_s22, 2048  ;;  %p582_p0 = scmp.lt.s32.totalorder %s693_s22, %s693_s22 }
  0x3c   :  { %p578_p13 = scmp.ne.s32.totalorder %s693_s22, %s577_s15  ;;  %p583_p1 = scmp.lt.s32.totalorder %s577_s15, %s577_s15 }
  0x3e   :  { %p584_p2 = por %p583_p1, %p582_p0 }
  0x40   :  { %p585_p3 = pnand %p584_p2, %p578_p13 }
  0x42   :  { %588 = shalt.err (!%p585_p3)
}
  0x43   :  { %63 = dma.hbm_to_vmem [thread:$0]  %s752_s4, 2048, %s693_s22, [#allocation9], %s621_s30, %s621_s30, %s622_s6  }
  0x44   :  { %611 = dma.done.wait [#allocation3], 256  }
  0x45   :  { %612 = vsyncadd [#allocation3], 4294967040 }
  0x46   :  { %613 = dma.done.wait [#allocation6], 2304  }
  0x47   :  { %614 = vsyncadd [#allocation6], 4294964992 }
  0x48   :  { %615 = dma.done.wait [#allocation9], 2048  }
  0x49   :  { %616 = vsyncadd [#allocation9], 4294965248  ;;  %v78_v0 = vld [vmem:[#allocation5] sm:$0xff]  ;;  %v79_v1 = vld [vmem:[#allocation5 + $0x8] sm:$0xff]  ;;  %s625_s17 = smov [#allocation10]  }
  0x4a   :  { %v80_v2 = vld [vmem:[#allocation5 + $0x10] sm:$0xff]  ;;  %v422_v3 = vpack.c.bf16 %v79_v1, %v78_v0  ;;  %v81_v4 = vld [vmem:[#allocation5 + $0x18] sm:$0xff]  ;;  %v82_v5 = vld [vmem:[#allocation5 + $0x20] sm:$0xff]  ;;  %s301_s18 = sshll.u32 %s625_s17, 4  ;;  %s302_s18 = int_to_ptr.vmem [resolvable:$true] %s301_s18 }
  0x4b   :  { %v426_v6 = vpack.c.bf16 %v81_v4, %v80_v2  ;;  %v83_v7 = vld [vmem:[#allocation5 + $0x28] sm:$0xff]  ;;  %v199_v8 = vld [vmem:[#allocation8] sm:$0xff]  ;;  %v200_v9 = vld [vmem:[#allocation8 + $0x8] sm:$0xff]  ;;  %s589_s19 = scalar_lea.vmem %s302_s18, 256  ;;  %p594_p5 = scmp.lt.s32.totalorder %s302_s18, %s302_s18 }
  0x4c   :  { %423 = vmatprep.subr.bf16.mxu1 %v422_v3  ;;  %v454_v10 = vpack.c.bf16 %v200_v9, %v199_v8  ;;  %v201_v11 = vld [vmem:[#allocation8 + $0x10] sm:$0xff]  ;;  %v202_v12 = vld [vmem:[#allocation8 + $0x18] sm:$0xff]  ;;  %v203_v14 = vld [vmem:[#allocation8 + $0x20] sm:$0xff]  ;;  %v430_v15 = vpack.c.bf16 %v83_v7, %v82_v5  ;;  %p590_p4 = scmp.ne.s32.totalorder %s302_s18, %s589_s19  ;;  %p595_p6 = scmp.lt.s32.totalorder %s589_s19, %s589_s19 }
  0x4d   :  { %425 = vmatpush3.bf16.msra.mxu1 %v422_v3  ;;  %v458_v13 = vpack.c.bf16 %v202_v12, %v201_v11  ;;  %v204_v16 = vld [vmem:[#allocation8 + $0x28] sm:$0xff]  ;;  %v84_v17 = vld [vmem:[#allocation5 + $0x30] sm:$0xff]  ;;  %v205_v20 = vld [vmem:[#allocation8 + $0x30] sm:$0xff] }
  0x4e   :  { %427 = vmatprep.subr.bf16.mxu1 %v426_v6  ;;  %455 = vmatprep.subr.bf16.mxu0 %v454_v10  ;;  %v85_v18 = vld [vmem:[#allocation5 + $0x38] sm:$0xff]  ;;  %v462_v19 = vpack.c.bf16 %v204_v16, %v203_v14  ;;  %v206_v21 = vld [vmem:[#allocation8 + $0x38] sm:$0xff]  ;;  %v76_v23 = vld [vmem:[#allocation2] sm:$0xff]  ;;  %p596_p7 = por %p595_p6, %p594_p5 }
  0x4f   :  { %457 = vmatpush3.bf16.msra.mxu0 %v454_v10  ;;  %v434_v22 = vpack.c.bf16 %v85_v18, %v84_v17  ;;  %v86_v24 = vld [vmem:[#allocation5 + $0x40] sm:$0xff]  ;;  %v87_v25 = vld [vmem:[#allocation5 + $0x48] sm:$0xff]  ;;  %384 = vmatprep.mubr.f32.mxu1 %v76_v23  ;;  %v466_v26 = vpack.c.bf16 %v206_v21, %v205_v20  ;;  %v207_v28 = vld [vmem:[#allocation8 + $0x40] sm:$0xff] }
  0x50   :  { %459 = vmatprep.subr.bf16.mxu0 %v458_v13  ;;  %v197_v27 = vld [vmem:[#allocation7] sm:$0xff]  ;;  %v208_v29 = vld [vmem:[#allocation8 + $0x48] sm:$0xff]  ;;  %v438_v30 = vpack.c.bf16 %v87_v25, %v86_v24  ;;  %v88_v31 = vld [vmem:[#allocation5 + $0x50] sm:$0xff]  ;;  %p597_p8 = pnand %p596_p7, %p590_p4 }
  0x51   :  { %429 = vmatpush3.bf16.msra.mxu1 %v426_v6  ;;  %419 = vmatprep.mubr.f32.mxu0 %v197_v27  ;;  %v89_v32 = vld [vmem:[#allocation5 + $0x58] sm:$0xff]  ;;  %v470_v33 = vpack.c.bf16 %v208_v29, %v207_v28  ;;  %v209_v34 = vld [vmem:[#allocation8 + $0x50] sm:$0xff]  ;;  %v210_v35 = vld [vmem:[#allocation8 + $0x58] sm:$0xff] }
  0x52   :  { %431 = vmatprep.subr.bf16.mxu1 %v430_v15  ;;  %v442_v36 = vpack.c.bf16 %v89_v32, %v88_v31  ;;  %v90_v37 = vld [vmem:[#allocation5 + $0x60] sm:$0xff]  ;;  %v91_v38 = vld [vmem:[#allocation5 + $0x68] sm:$0xff]  ;;  %v474_v39 = vpack.c.bf16 %v210_v35, %v209_v34  ;;  %v211_v40 = vld [vmem:[#allocation8 + $0x60] sm:$0xff] }
  0x53   :  { %461 = vmatpush3.bf16.msra.mxu0 %v458_v13  ;;  %v212_v41 = vld [vmem:[#allocation8 + $0x68] sm:$0xff]  ;;  %v446_v42 = vpack.c.bf16 %v91_v38, %v90_v37  ;;  %v92_v43 = vld [vmem:[#allocation5 + $0x70] sm:$0xff]  ;;  %v213_v46 = vld [vmem:[#allocation8 + $0x70] sm:$0xff] }
  0x54   :  { %463 = vmatprep.subr.bf16.mxu0 %v462_v19  ;;  %v93_v44 = vld [vmem:[#allocation5 + $0x78] sm:$0xff]  ;;  %v478_v45 = vpack.c.bf16 %v212_v41, %v211_v40  ;;  %v214_v47 = vld [vmem:[#allocation8 + $0x78] sm:$0xff]  ;;  %v315_v52 = vld [vmem:[%s750_s2] ss:$0 sm:$0xff] }
  0x55   :  { %433 = vmatpush3.bf16.msra.mxu1 %v430_v15  ;;  %v450_v48 = vpack.c.bf16 %v93_v44, %v92_v43  ;;  %v482_v49 = vpack.c.bf16 %v214_v47, %v213_v46  ;;  %v77_v50 = vld [vmem:[#allocation2 + $0x8] sm:$0xff]  ;;  %v198_v51 = vld [vmem:[#allocation7 + $0x8] sm:$0xff] }
  0x56   :  { %435 = vmatprep.subr.bf16.mxu1 %v434_v22 }
  0x57   :  { %465 = vmatpush3.bf16.msra.mxu0 %v462_v19 }
  0x58   :  { %467 = vmatprep.subr.bf16.mxu0 %v466_v26 }
  0x59   :  { %437 = vmatpush3.bf16.msra.mxu1 %v434_v22 }
  0x5a   :  { %439 = vmatprep.subr.bf16.mxu1 %v438_v30 }
  0x5b   :  { %469 = vmatpush3.bf16.msra.mxu0 %v466_v26 }
  0x5c   :  { %471 = vmatprep.subr.bf16.mxu0 %v470_v33 }
  0x5d   :  { %441 = vmatpush3.bf16.msra.mxu1 %v438_v30 }
  0x5e   :  { %443 = vmatprep.subr.bf16.mxu1 %v442_v36 }
  0x5f   :  { %473 = vmatpush3.bf16.msra.mxu0 %v470_v33 }
  0x60   :  { %475 = vmatprep.subr.bf16.mxu0 %v474_v39 }
  0x61   :  { %445 = vmatpush3.bf16.msra.mxu1 %v442_v36 }
  0x62   :  { %447 = vmatprep.subr.bf16.mxu1 %v446_v42 }
  0x63   :  { %477 = vmatpush3.bf16.msra.mxu0 %v474_v39 }
  0x64   :  { %479 = vmatprep.subr.bf16.mxu0 %v478_v45 }
  0x65   :  { %449 = vmatpush3.bf16.msra.mxu1 %v446_v42 }
  0x66   :  { %451 = vmatprep.subr.bf16.mxu1 %v450_v48 }
  0x67   :  { %481 = vmatpush3.bf16.msra.mxu0 %v478_v45 }
  0x68   :  { %483 = vmatprep.subr.bf16.mxu0 %v482_v49 }
  0x69   :  { %453 = vmatpush3.bf16.msra.mxu1 %v450_v48 }
  0x6b   :  { %485 = vmatpush3.bf16.msra.mxu0 %v482_v49 }
  0x6c   :  { %385 = vmatmul.mubr.f32.vlgmr.msra.gmra.mrb[0].mxu1 %v77_v50 }
  0x6e   :  { %420 = vmatmul.mubr.f32.vlgmr.msra.gmra.mrb[0].mxu0 %v198_v51 }
 0x13f   :  { %v386_v53 = vpop.f32.mrb[0].mxu1 }
 0x140   :  { %v181_v54 = vadd.f32 %v386_v53, %v315_v52  ;;  %v160_v55 = vpop.f32.mrb[1].mxu1 }
 0x141   :  { %v180_v56 = vadd.f32 %v315_v52, %v160_v55  ;;  %v421_v57 = vpop.f32.mrb[0].mxu0 }
 0x142   :  { %v489_v58 = vadd.f32 %v421_v57, %v181_v54  ;;  %v281_v59 = vpop.f32.mrb[1].mxu0 }
 0x143   :  { %v493_v60 = vadd.f32 %v281_v59, %v180_v56 }
 0x144   :  { %295 = vst [vmem:[#allocation10 + $0x8] sm:$0xff] %v489_v58 }
 0x145   :  { %294 = vst [vmem:[#allocation10] sm:$0xff] %v493_v60 }
 0x146   :  { %600 = shalt.err (!%p597_p8)
}
 0x147   :  { %s601_s22 = scalar_lea.hbm %s753_s5, 256 }
 0x148   :  { %p602_p9 = scmp.ne.s32.totalorder %s753_s5, %s601_s22  ;;  %p605_p10 = scmp.lt.u32.totalorder %s601_s22, %s753_s5 }
 0x14a   :  { %p607_p11 = pnand %p605_p10, %p602_p9 }
 0x14c   :  { %610 = shalt.err (!%p607_p11)
}
 0x14d   :  { %307 = dma.vmem_to_hbm [thread:$0]  %s302_s18, 256, %s753_s5, [#allocation4], %s621_s30, %s621_s30, %s622_s6  }
 0x14e   :  { %617 = dma.done.wait [#allocation4], 256  }
 0x14f   :  { %618 = vsyncadd [#allocation4], 4294967040 }
 0x150   :  { %311 = vsyncpa [#allocation3], 1 }
 0x151   :  { %312 = vsyncpa [#allocation6], 1 }
 0x152   :  { %313 = vsyncpa [#allocation9], 1 }
 0x153   :  { %314 = vsyncpa [#allocation4], 1 }

</bundles_post_ra>
